<compile_context>
chip_gen: v7x
topology: tpu7x:2x2x1
jax: 0.10.0
libtpu: 0.0.40
codegen_flags: <defaults>
</compile_context>

<pallas_src>
import functools

import jax
import jax.numpy as jnp
from jax.experimental import pallas as pl
from jax.experimental.pallas import tpu as pltpu


# ---------------------------------------------------------------------------
# Path A: VMEM-resident table, one-hot MXU gather (small / typical tables)
# ---------------------------------------------------------------------------

def _onehot_gather_kernel(idx_ref, t_hi_ref, t_mid_ref, t_lo_ref, out_ref, *, V):
    """One grid step: gather `rows` embedding rows with a one-hot MXU matmul.

    idx_ref  : (rows, 1) int32  VMEM  lookup ids for this block
    t_*_ref  : (V, D)    bf16   VMEM  hi/mid/lo bf16 planes of the f32 table
    out_ref  : (rows, D) f32    VMEM  gathered embeddings
    """
    rows = out_ref.shape[0]
    # Clamp OOB / negative ids to the last (OOV) bucket.
    ids = jnp.clip(idx_ref[...], 0, V - 1)                        # (rows, 1)
    col = jax.lax.broadcasted_iota(jnp.int32, (rows, V), 1)       # (rows, V)
    # Exact {0,1} selector in bf16 -> each matmul is a bit-exact row select
    # accumulated in f32 (1.0 * x + 0.0 * ... is exact).
    onehot = jnp.where(ids == col, 1.0, 0.0).astype(jnp.bfloat16)  # (rows, V)
    acc = jnp.dot(onehot, t_hi_ref[...], preferred_element_type=jnp.float32)
    acc = acc + jnp.dot(onehot, t_mid_ref[...], preferred_element_type=jnp.float32)
    acc = acc + jnp.dot(onehot, t_lo_ref[...], preferred_element_type=jnp.float32)
    out_ref[...] = acc.astype(out_ref.dtype)


def _split_f32_to_bf16x3(x):
    """Exact-ish 3-plane bf16 decomposition of an f32 array (hi+mid+lo ~= x to ~1 ulp)."""
    hi = x.astype(jnp.bfloat16)
    r1 = x - hi.astype(jnp.float32)
    mid = r1.astype(jnp.bfloat16)
    lo = (r1 - mid.astype(jnp.float32)).astype(jnp.bfloat16)
    return hi, mid, lo


def _forward_onehot(indices, table, rows):
    B, L = indices.shape
    V, D = table.shape
    N = B * L

    n_blocks = pl.cdiv(N, rows)
    n_pad = n_blocks * rows

    idx = indices.reshape(N, 1).astype(jnp.int32)
    if n_pad != N:                                  # ragged batch: pad with id 0
        idx = jnp.pad(idx, ((0, n_pad - N), (0, 0)))

    t_hi, t_mid, t_lo = _split_f32_to_bf16x3(table)

    # Full-array table block with a constant index map -> DMA'd into VMEM once
    # and kept resident across all grid steps.
    tab_spec = pl.BlockSpec((V, D), lambda i: (0, 0))

    gathered = pl.pallas_call(
        functools.partial(_onehot_gather_kernel, V=V),
        out_shape=jax.ShapeDtypeStruct((n_pad, D), jnp.float32),
        grid=(n_blocks,),
        in_specs=[
            pl.BlockSpec((rows, 1), lambda i: (i, 0)),   # lookup ids
            tab_spec, tab_spec, tab_spec,                # bf16 table planes
        ],
        out_specs=pl.BlockSpec((rows, D), lambda i: (i, 0)),
        compiler_params=pltpu.CompilerParams(
            dimension_semantics=("parallel",),           # shard blocks across TCs
            vmem_limit_bytes=32 * 1024 * 1024,
        ),
    )(idx, t_hi, t_mid, t_lo)

    # Flatten hoisted out of the kernel: free row-major reshape.
    return gathered[:N].reshape(B, L * D)


# ---------------------------------------------------------------------------
# Path B: table stays in HBM, scalar-prefetch-driven row-DMA gather (large V)
# ---------------------------------------------------------------------------

def _dma_gather_kernel(idx_smem, table_hbm, out_ref, copy_sems, *, rows, V):
    """One grid step: DMA-gather `rows` embedding rows into the output block.

    idx_smem  : (N_pad,)  int32   SMEM (scalar-prefetched flat lookup ids)
    table_hbm : (V, D)    f32     HBM  (memory_space=pl.ANY)
    out_ref   : (rows, D) f32     VMEM output block
    copy_sems : (rows,)   DMA semaphores
    """
    base = pl.program_id(0) * rows
    copies = []
    for j in range(rows):                      # static unroll; rows is bounded
        raw = idx_smem[base + j]
        row_id = jnp.clip(raw, 0, V - 1)       # OOB -> OOV bucket
        cp = pltpu.make_async_copy(
            table_hbm.at[pl.ds(row_id, 1), :],
            out_ref.at[pl.ds(j, 1), :],
            copy_sems.at[j],
        )
        cp.start()
        copies.append(cp)
    for cp in copies:                          # all row DMAs in flight; drain
        cp.wait()


def _forward_dma(indices, table, rows):
    B, L = indices.shape
    V, D = table.shape
    N = B * L

    n_blocks = pl.cdiv(N, rows)
    n_pad = n_blocks * rows

    idx_flat = indices.reshape(N).astype(jnp.int32)
    if n_pad != N:
        idx_flat = jnp.pad(idx_flat, (0, n_pad - N))

    gathered = pl.pallas_call(
        functools.partial(_dma_gather_kernel, rows=rows, V=V),
        out_shape=jax.ShapeDtypeStruct((n_pad, D), jnp.float32),
        grid_spec=pltpu.PrefetchScalarGridSpec(
            num_scalar_prefetch=1,                       # flat ids -> SMEM
            grid=(n_blocks,),
            in_specs=[
                pl.BlockSpec(memory_space=pl.ANY),       # table stays in HBM
            ],
            out_specs=pl.BlockSpec((rows, D), lambda i, idx_ref: (i, 0)),
            scratch_shapes=[pltpu.SemaphoreType.DMA((rows,))],
        ),
        compiler_params=pltpu.CompilerParams(
            dimension_semantics=("parallel",),
            vmem_limit_bytes=32 * 1024 * 1024,
        ),
    )(idx_flat, table)

    return gathered[:N].reshape(B, L * D)


# ---------------------------------------------------------------------------
# Dispatcher + reference
# ---------------------------------------------------------------------------

def _pick_rows_per_block(n_lookups, max_rows):
    """Short grid (per-step overhead ~0.35us) but >= 2 blocks so both v7x
    TensorCores get work; keep the sublane dim a multiple of 8."""
    r = min(max_rows, max(8, n_lookups // 2))
    return max(8, (r // 8) * 8)


def embedding_layer_forward(indices, table, *, rows_per_block=None,
                            small_table_max_rows=2048,
                            small_table_max_bytes=4 * 1024 * 1024):
    """indices: (B, L) int; table: (V, D) float32 -> (B, L*D) float32."""
    V, D = table.shape
    N = indices.shape[0] * indices.shape[1]
    table = table.astype(jnp.float32)

    use_vmem = (V <= small_table_max_rows) and (V * D * 4 <= small_table_max_bytes)

    if rows_per_block is None:
        rows = _pick_rows_per_block(N, 256 if use_vmem else 128)
    else:
        rows = max(8, (int(rows_per_block) // 8) * 8)

    if use_vmem:
        return _forward_onehot(indices, table, rows)
    return _forward_dma(indices, table, rows)


def reference_forward(indices, table):
    """Pure-JAX reference mirroring torch: embedding lookup + flatten."""
    B, L = indices.shape
    D = table.shape[1]
    return jnp.take(table, indices.reshape(-1), axis=0).reshape(B, L * D)


if __name__ == "__main__":
    # Module hyper-parameters (small, consistent with __init__):
    #   lookup_keys = list(range(31)), num_oov_buckets = 1 -> cardinality V = 32
    #   lookups_per_sample L = 4, output_dimension D = 64
    V, L, D, B = 32, 4, 64, 16

    key = jax.random.PRNGKey(0)
    k_tab, k_idx, k_tab2, k_idx2 = jax.random.split(key, 4)

    # Deterministic parameter init (nn.Embedding default ~ N(0,1)).
    table = jax.random.normal(k_tab, (V, D), dtype=jnp.float32)
    indices = jax.random.randint(k_idx, (B, L), 0, V, dtype=jnp.int32)

    out = jax.block_until_ready(embedding_layer_forward(indices, table))
    ref = reference_forward(indices, table)
    assert out.shape == (B, L * D)
    # One-hot select + 3-plane bf16 split reconstructs f32 to ~1 ulp.
    assert jnp.allclose(out, ref, atol=1e-5, rtol=1e-5), \
        float(jnp.max(jnp.abs(out - ref)))

    # Large-cardinality fallback path (table kept in HBM, DMA row gather).
    V2, B2, L2 = 4096, 4, 4
    table2 = jax.random.normal(k_tab2, (V2, D), dtype=jnp.float32)
    indices2 = jax.random.randint(k_idx2, (B2, L2), 0, V2, dtype=jnp.int32)
    out2 = jax.block_until_ready(embedding_layer_forward(indices2, table2))
    ref2 = reference_forward(indices2, table2)
    assert out2.shape == (B2, L2 * D)
    # DMA row gather is a pure copy -> bit-exact vs. jnp.take.
    assert jnp.allclose(out2, ref2, atol=1e-6, rtol=1e-6)

    print("KERNEL_OK")
</pallas_src>

<mosaic_0001>
module attributes {stable_mosaic.version = 11 : i64} {
  func.func @_onehot_gather_kernel(%arg0: i32, %arg1: memref<32x1xi32, #tpu.memory_space<vmem>>, %arg2: memref<32x64xbf16, #tpu.memory_space<vmem>>, %arg3: memref<32x64xbf16, #tpu.memory_space<vmem>>, %arg4: memref<32x64xbf16, #tpu.memory_space<vmem>>, %arg5: memref<32x64xf32, #tpu.memory_space<vmem>>) attributes {dimension_semantics = [#tpu.dimension_semantics<parallel>], iteration_bounds = array<i64: 2>, scalar_prefetch = 0 : i64, scratch_operands = 0 : i64, tpu.core_type = #tpu.core_type<tc>, window_params = [{transform_indices = @transform_0, window_bounds = array<i64: 32, 1>}, {pipeline_mode = #tpu.pipeline_mode<synchronous>, transform_indices = @transform_1, window_bounds = array<i64: 32, 64>}, {pipeline_mode = #tpu.pipeline_mode<synchronous>, transform_indices = @transform_2, window_bounds = array<i64: 32, 64>}, {pipeline_mode = #tpu.pipeline_mode<synchronous>, transform_indices = @transform_3, window_bounds = array<i64: 32, 64>}, {transform_indices = @transform_4, window_bounds = array<i64: 32, 64>}]} {
    %c0 = arith.constant 0 : index
    %c0_0 = arith.constant 0 : index
    %0 = vector.load %arg1[%c0, %c0_0] : memref<32x1xi32, #tpu.memory_space<vmem>>, vector<32x1xi32>
    %c0_i32 = arith.constant 0 : i32
    %c31_i32 = arith.constant 31 : i32
    %1 = vector.broadcast %c0_i32 : i32 to vector<32x1xi32>
    %2 = arith.maxsi %1, %0 : vector<32x1xi32>
    %3 = vector.broadcast %c31_i32 : i32 to vector<32x1xi32>
    %4 = arith.minsi %3, %2 : vector<32x1xi32>
    %5 = tpu.iota {dimensions = array<i32: 1>} : vector<32x32xi32>
    %6 = vector.broadcast %4 : vector<32x1xi32> to vector<32x32xi32>
    %7 = arith.cmpi eq, %6, %5 : vector<32x32xi32>
    %cst = arith.constant 1.000000e+00 : f32
    %cst_1 = arith.constant 0.000000e+00 : f32
    %8 = vector.broadcast %cst : f32 to vector<32x32xf32>
    %9 = vector.broadcast %cst_1 : f32 to vector<32x32xf32>
    %10 = arith.select %7, %8, %9 : vector<32x32xi1>, vector<32x32xf32>
    %11 = arith.truncf %10 : vector<32x32xf32> to vector<32x32xbf16>
    %c0_2 = arith.constant 0 : index
    %c0_3 = arith.constant 0 : index
    %12 = vector.load %arg2[%c0_2, %c0_3] : memref<32x64xbf16, #tpu.memory_space<vmem>>, vector<32x64xbf16>
    %cst_4 = arith.constant dense<0.000000e+00> : vector<32x64xf32>
    %13 = tpu.matmul %11, %12, %cst_4 {dimension_numbers = #tpu.dot_dimension_numbers<[1], [0], [0], [1], [0, 0, 1, 1], [], []>} : vector<32x32xbf16>, vector<32x64xbf16>, vector<32x64xf32> -> vector<32x64xf32>
    %c0_5 = arith.constant 0 : index
    %c0_6 = arith.constant 0 : index
    %14 = vector.load %arg3[%c0_5, %c0_6] : memref<32x64xbf16, #tpu.memory_space<vmem>>, vector<32x64xbf16>
    %cst_7 = arith.constant dense<0.000000e+00> : vector<32x64xf32>
    %15 = tpu.matmul %11, %14, %cst_7 {dimension_numbers = #tpu.dot_dimension_numbers<[1], [0], [0], [1], [0, 0, 1, 1], [], []>} : vector<32x32xbf16>, vector<32x64xbf16>, vector<32x64xf32> -> vector<32x64xf32>
    %16 = arith.addf %13, %15 : vector<32x64xf32>
    %c0_8 = arith.constant 0 : index
    %c0_9 = arith.constant 0 : index
    %17 = vector.load %arg4[%c0_8, %c0_9] : memref<32x64xbf16, #tpu.memory_space<vmem>>, vector<32x64xbf16>
    %cst_10 = arith.constant dense<0.000000e+00> : vector<32x64xf32>
    %18 = tpu.matmul %11, %17, %cst_10 {dimension_numbers = #tpu.dot_dimension_numbers<[1], [0], [0], [1], [0, 0, 1, 1], [], []>} : vector<32x32xbf16>, vector<32x64xbf16>, vector<32x64xf32> -> vector<32x64xf32>
    %19 = arith.addf %16, %18 : vector<32x64xf32>
    %c0_11 = arith.constant 0 : index
    %c0_12 = arith.constant 0 : index
    %20 = vector.load %arg5[%c0_11, %c0_12] : memref<32x64xf32, #tpu.memory_space<vmem>>, vector<32x64xf32>
    tpu.vector_store %arg5[%c0_11, %c0_12], %19 {strides = array<i32>} : memref<32x64xf32, #tpu.memory_space<vmem>>, vector<32x64xf32>,
    return
  }
  func.func @transform_0(%arg0: i32) -> (i32, i32) {
    %c0_i32 = arith.constant 0 : i32
    %c0_i32_0 = arith.constant 0 : i32
    return %arg0, %c0_i32 : i32, i32
  }
  func.func @transform_1(%arg0: i32) -> (i32, i32) {
    %c0_i32 = arith.constant 0 : i32
    %c0_i32_0 = arith.constant 0 : i32
    %c0_i32_1 = arith.constant 0 : i32
    return %c0_i32, %c0_i32_0 : i32, i32
  }
  func.func @transform_2(%arg0: i32) -> (i32, i32) {
    %c0_i32 = arith.constant 0 : i32
    %c0_i32_0 = arith.constant 0 : i32
    %c0_i32_1 = arith.constant 0 : i32
    return %c0_i32, %c0_i32_0 : i32, i32
  }
  func.func @transform_3(%arg0: i32) -> (i32, i32) {
    %c0_i32 = arith.constant 0 : i32
    %c0_i32_0 = arith.constant 0 : i32
    %c0_i32_1 = arith.constant 0 : i32
    return %c0_i32, %c0_i32_0 : i32, i32
  }
  func.func @transform_4(%arg0: i32) -> (i32, i32) {
    %c0_i32 = arith.constant 0 : i32
    %c0_i32_0 = arith.constant 0 : i32
    return %arg0, %c0_i32 : i32, i32
  }
}

</mosaic_0001>

<bundles_post_ra>
// kernel: tpu_custom_call.1
= control target key start
LH: loop header
LB: loop body
LE: loop exit
PB: predicated region body
PF: predicated region fallthrough
CT: control target
= control target key end

     0   :  { %9 = vsyncpa [#allocation3], 0  ;;  %s875_s0 = inlined_call_operand.vmem [shape: s32[64,1], index: 0, kind: input, shape index: {}]   ;;  %s876_s1 = inlined_call_operand.vmem [shape: bf16[32,64], index: 1, kind: input, shape index: {}]   ;;  %s877_s2 = inlined_call_operand.vmem [shape: bf16[32,64], index: 2, kind: input, shape index: {}]   ;;  %s878_s3 = inlined_call_operand.vmem [shape: bf16[32,64], index: 3, kind: input, shape index: {}]   ;;  %s879_s4 = inlined_call_operand.hbm [shape: f32[64,64], index: 4, kind: output, shape index: {}]  }
   0x1   :  { %11 = vsyncpa [#allocation3 + $0x1], 0  ;;  %s745_s15 = smov 0   ;;  %s747_s16 = smov 0  }
   0x2   :  { %s749_s17 = smov 0   ;;  %s751_s18 = smov 0  }
   0x3 LB: > { %s766_s19 = sadd.s32 4294967295, %s713_s18   ;;  %s531_s20 = sadd.s32 4294967294, %s713_s18   ;;  %s713_s18 = sphi %s751_s18, %s885_s18   ;;  %s709_s17 = sphi %s749_s17, %s884_s17   ;;  %s705_s16 = sphi %s747_s16, %s883_s16   ;;  %s701_s15 = sphi %s745_s15, %s882_s15  }
   0x4   : > { %s770_s21 = sadd.s32 1, %s713_s18   ;;  %s113_s22 = sadd.s32 1, %s709_s17 }
   0x5   : > { %s110_s23 = ssub.s32 %s713_s18, %s770_s21  ;;  %p123_p0 = scmp.ne.s32.totalorder %s709_s17, %s705_s16 }
   0x6   : > { %p111_p1 = scmp.eq.s32.totalorder %s110_s23, 0  ;;  %p124_p2 = scmp.eq.s32.totalorder %s766_s19, 1 }
   0x7   : > { %p129_p3 = scmp.ne.s32.totalorder %s705_s16, %s701_s15  ;;  %p130_p4 = scmp.eq.s32.totalorder %s531_s20, 1 }
   0x8   : > { %s781_s24 = scalar_select %p111_p1, %s709_s17, %s113_s22  }
   0x9   : > { %p783_p5 = por %p124_p2, %p123_p0  ;;  %p787_p6 = por %p130_p4, %p129_p3 }
   0xa   : > { %p534_p7 = scmp.ge.s32.totalorder %s713_s18, 1  ;;  %p166_p8 = scmp.lt.s32.totalorder %s713_s18, 3 }
   0xc   : > { %p167_p9 = pnand %p534_p7, %p166_p8 }
   0xd   : > { %s536_s27 = sshll.u32 (!%p167_p9), %s766_s19, 2  ;;  %v715_v0 = vmov (!%p167_p9), 0   ;;  %v645_v11 = vld [vmem:[%s876_s1] sm:$0xff] (!%p167_p9)   ;;  %v647_v15 = vld [vmem:[%s876_s1 + $0x8] sm:$0xff] (!%p167_p9)   ;;  %v220_v18 = vlaneseq (!%p167_p9)  ;;  %vm264_vm12 = vcmask (!%p167_p9), 261120   ;;  %v716_v24 = vmov (!%p167_p9), 0.0  }
   0xe   : > { %170 = sbr.rel (%p167_p9) target bundleno = 410 (0x19a), region = 36  ;;  %644 = vset.pattern.permute.xlu1 (!%p167_p9), %v715_v0  ;;  %643 = vset.pattern.permute.xlu0 (!%p167_p9), %v715_v0  ;;  %p193_p10 = scmp.lt.s32.totalorder (!%p167_p9), %s536_s27, 7  ;;  %v646_v12 = vld [vmem:[%s877_s2] sm:$0xff] (!%p167_p9)   ;;  %v648_v16 = vld [vmem:[%s877_s2 + $0x8] sm:$0xff] (!%p167_p9)   ;;  %vm450_vm13 = vcmask (!%p167_p9), 523264  }
   0xf   : > { %576 = vmatprep.subr.bf16.mxu0 (!%p167_p9), %v645_v11  ;;  %568 = vmatprep.subr.bf16.mxu1 (!%p167_p9), %v646_v12  ;;  %v649_v17 = vld [vmem:[%s878_s3] sm:$0xff] (!%p167_p9)   ;;  %v221_v19 = vand.u32 (!%p167_p9), 127, %v220_v18  ;;  %v650_v31 = vld [vmem:[%s878_s3 + $0x8] sm:$0xff] (!%p167_p9)   ;;  %s717_s10 = smov (!%p167_p9), [#allocation2]  }
  0x10   : > { %577 = vmatpush3.bf16.msra.mxu0 (!%p167_p9), %v645_v11  ;;  %569 = vmatpush3.bf16.msra.mxu1 (!%p167_p9), %v646_v12  ;;  %s655_s11 = sshll.u32 (!%p167_p9), %s717_s10, 4  ;;  %s656_s11 = int_to_ptr.vmem [resolvable:$false] %s655_s11 }
  0x11   : > { %578 = vmatprep.subr.bf16.mxu0 (!%p167_p9), %v647_v15  ;;  %570 = vmatprep.subr.bf16.mxu1 (!%p167_p9), %v648_v16  ;;  %s657_s12 = scalar_lea.vmem (!%p167_p9), %s656_s11, 1024 }
  0x14   : > { %579 = vmatpush3.bf16.msra.mxu0 (!%p167_p9), %v647_v15  ;;  %571 = vmatpush3.bf16.msra.mxu1 (!%p167_p9), %v648_v16 }
  0x15   : > { %s887_s27 = smov (!%p193_p10, %s536_s27), 7  ;;  %584 = vmatprep.subr.bf16.mxu0 %v649_v17 }
  0x16   : > { %s537_s28 = sshll.u32 %s887_s27, 3  ;;  %s189_s27 = sand.u32 1, %s705_s16  }
  0x17   : > { %s196_s5 = scalar_lea.vmem %s875_s0, %s537_s28  ;;  %s535_s28 = sshll.u32 %s189_s27, 5 }
  0x18   : > { %v202_v1 = vld [vmem:[%s196_s5 + $0x10] sm:$0xff]  ;;  %v200_v2 = vld [vmem:[%s196_s5] sm:$0xff]  ;;  %v203_v3 = vld [vmem:[%s196_s5 + $0x18] sm:$0xff]  ;;  %s191_s29 = scalar_lea.vmem [#allocation2], %s535_s28 }
  0x19   : > { %vm208_vm0 = vcmp.gt.s32.totalorder %v202_v1, 0  ;;  %vm204_vm1 = vcmp.gt.s32.totalorder %v200_v2, 0  ;;  %vm210_vm2 = vcmp.gt.s32.totalorder %v203_v3, 0  ;;  %v201_v4 = vld [vmem:[%s196_s5 + $0x8] sm:$0xff]  ;;  %s469_s30 = sshll.u32 %s191_s29, 4  ;;  %s555_s5 = sshll.u32 %s766_s19, 9  ;;  %s824_s30 = int_to_ptr.vmem [resolvable:$true] %s469_s30 }
  0x1a   : > { %v209_v5 = vsel %vm208_vm0, %v202_v1, 0  ;;  %v205_v6 = vsel %vm204_vm1, %v200_v2, 0  ;;  %v211_v7 = vsel %vm210_vm2, %v203_v3, 0  ;;  %vm206_vm3 = vcmp.gt.s32.totalorder %v201_v4, 0  ;;  %s829_s8 = scalar_lea.hbm %s879_s4, %s555_s5  ;;  %s834_s19 = scalar_lea.sflag [#allocation3], %s189_s27 }
  0x1b   : > { %vm216_vm4 = vcmp.lt.s32.totalorder %v209_v5, 31  ;;  %vm212_vm5 = vcmp.lt.s32.totalorder %v205_v6, 31  ;;  %vm218_vm6 = vcmp.lt.s32.totalorder %v211_v7, 31  ;;  %v207_v8 = vsel %vm206_vm3, %v201_v4, 0  ;;  %s651_s9 = scalar_lea.vmem %s824_s30, 512  ;;  %p658_p0 = scmp.lt.s32.totalorder %s824_s30, %s656_s11 }
  0x1c   : > { %v217_v9 = vsel %vm216_vm4, %v209_v5, 31  ;;  %v213_v10 = vsel %vm212_vm5, %v205_v6, 31  ;;  %vm214_vm7 = vcmp.lt.s32.totalorder %v207_v8, 31  ;;  %v219_v13 = vsel %vm218_vm6, %v211_v7, 31  ;;  %p652_p11 = scmp.ne.s32.totalorder %s824_s30, %s651_s9  ;;  %p659_p1 = scmp.lt.s32.totalorder %s657_s12, %s651_s9 }
  0x1d   : > { %229 = vperm.xlu1 %644, %v217_v9   ;;  %223 = vperm.xlu0 %643, %v213_v10   ;;  %v215_v14 = vsel %vm214_vm7, %v207_v8, 31 }
  0x1e   : > { %p653_p12 = pnand %p652_p11, %p783_p5  ;;  %p660_p2 = por %p659_p1, %p658_p0 }
  0x20   : > { %p654_p13 = pneg %p653_p12 }
  0x21   : > { %232 = vperm.xlu1 %644, %v219_v13   ;;  %226 = vperm.xlu0 %643, %v215_v14  }
  0x22   : > { %p661_p3 = pnand %p660_p2, %p654_p13 }
  0x9c   : > { %v230_v20 = vpop.permute.xlu1 %229  ;;  %v224_v21 = vpop.permute.xlu0 %223 }
  0x9d   : > { %vm236_vm8 = vcmp.eq.s32.totalorder %v230_v20, %v221_v19  ;;  %vm234_vm9 = vcmp.eq.s32.totalorder %v224_v21, %v221_v19 }
  0x9e   : > { %v240_v25 = vsel %vm236_vm8, 1.0, %v716_v24  ;;  %v238_v26 = vsel %vm234_vm9, 1.0, %v716_v24 }
  0xa0   : > { %v233_v22 = vpop.permute.xlu1 %232  ;;  %v227_v23 = vpop.permute.xlu0 %226 }
  0xa1   : > { %vm237_vm10 = vcmp.eq.s32.totalorder %v233_v22, %v221_v19  ;;  %vm235_vm11 = vcmp.eq.s32.totalorder %v227_v23, %v221_v19 }
  0xa2   : > { %v241_v27 = vsel %vm237_vm10, 1.0, %v716_v24  ;;  %v239_v28 = vsel %vm235_vm11, 1.0, %v716_v24 }
  0xa3   : > { %v243_v29 = vpack.c.bf16 %v241_v27, %v240_v25  ;;  %v242_v30 = vpack.c.bf16 %v239_v28, %v238_v26 }
  0xa5   : > { %572 = vmatprep.mubr.msk.bf16.mxu1 %vm264_vm12, %v242_v30  ;;  %580 = vmatprep.mubr.msk.bf16.mxu0 %vm264_vm12, %v242_v30 }
  0xa6   : > { %573 = vmatmul.mubr.msk.bf16.vlgmr.msra.gmra.mrb[0].mxu1 %vm264_vm12, %v243_v29  ;;  %581 = vmatmul.mubr.msk.bf16.vlgmr.msra.gmra.mrb[0].mxu0 %vm264_vm12, %v243_v29 }
  0xa7   : > { %585 = vmatpush3.bf16.msra.mxu0 %v649_v17  ;;  %588 = vmatprep.mubr.msk.bf16.mxu0 %vm264_vm12, %v242_v30 }
  0xa8   : > { %586 = vmatprep.subr.bf16.mxu0 %v650_v31 }
  0xab   : > { %587 = vmatpush3.bf16.msra.mxu0 %v650_v31 }
  0xb2   : > { %589 = vmatmul.mubr.msk.bf16.vlgmr.msra.gmra.mrb[0].mxu0 %vm264_vm12, %v243_v29 }
 0x179   : > { %v574_v32 = vpop.f32.mrb[0].mxu1 }
 0x17a   : > { %v305_v33 = vpop.f32.mrb[1].mxu1 }
 0x17b   : > { %v575_v34 = vpop.f32.mrb[2].mxu1 }
 0x17c   : > { %v308_v35 = vpop.f32.mrb[3].mxu1 }
 0x185   : > { %v590_v36 = vpop.f32.mrb[0].mxu0 }
 0x186   : > { %v592_v37 = vadd.f32 %v590_v36, %v574_v32  ;;  %v431_v38 = vpop.f32.mrb[1].mxu0 }
 0x187   : > { %v593_v39 = vadd.f32 %v431_v38, %v305_v33  ;;  %v591_v40 = vpop.f32.mrb[2].mxu0 }
 0x188   : > { %453 = vst.msk [vmem:[%s191_s29 + $0x10] sm:$0xff] %vm450_vm13, %v592_v37  ;;  %v594_v41 = vadd.f32 %v591_v40, %v575_v34  ;;  %v434_v42 = vpop.f32.mrb[3].mxu0 }
 0x189   : > { %451 = vst.msk [vmem:[%s191_s29] sm:$0xff] %vm450_vm13, %v593_v39  ;;  %v595_v43 = vadd.f32 %v434_v42, %v308_v35 }
 0x18a   : > { %454 = vst.msk [vmem:[%s191_s29 + $0x18] sm:$0xff] %vm450_vm13, %v594_v41 }
 0x18b   : > { %452 = vst.msk [vmem:[%s191_s29 + $0x8] sm:$0xff] %vm450_vm13, %v595_v43 }
 0x18c   : > { %664 = shalt.err (!%p661_p3)
}
 0x18d   : > { %s665_s13 = scalar_lea.hbm %s829_s8, 512  ;;  %s669_s22 = scalar_lea.hbm %s879_s4, 1024 }
 0x18e   : > { %p666_p4 = scmp.ne.s32.totalorder %s829_s8, %s665_s13  ;;  %p670_p9 = scmp.lt.u32.totalorder %s829_s8, %s879_s4 }
 0x18f   : > { %p671_p10 = scmp.lt.u32.totalorder %s669_s22, %s665_s13  ;;  %p673_p12 = scmp.lt.u32.totalorder %s665_s13, %s829_s8 }
 0x190   : > { %p667_p7 = pnand %p666_p4, %p783_p5 }
 0x191   : > { %p672_p11 = por %p671_p10, %p670_p9 }
 0x192   : > { %p668_p8 = pneg %p667_p7 }
 0x193   : > { %p674_p13 = por %p673_p12, %p672_p11 }
 0x195   : > { %p675_p0 = pnand %p674_p13, %p668_p8 }
 0x197   : > { %678 = shalt.err (!%p675_p0)
}
 0x198   : > { %s718_s28 = smov 128   ;;  %s719_s29 = smov 8  }
 0x199   : > { %600 = dma.vmem_to_hbm [thread:$0]  (%p783_p5), %s824_s30, 512, %s829_s8, %s834_s19, %s718_s28, %s718_s28, %s719_s29  }
 0x19a PF: > { %p606_p1 = scmp.ge.s32.totalorder %s713_s18, 2  ;;  %s484_s5 = sand.u32 1, %s701_s15  }
 0x19b   : > { %s485_s6 = scalar_lea.sflag [#allocation3], %s484_s5 }
 0x19c   : > { %p603_p2 = pnand %p606_p1, %p787_p6 }
 0x19e   : > { %696 = dma.done.wait (!%p603_p2), %s485_s6, 512  }
 0x19f   : > { %698 = vsyncadd (!%p603_p2), %s485_s6, 4294966784  ;;  %p14_p3 = scmp.ge.s32.totalorder %s770_s21, 4   ;;  %s882_s15 = smov %s705_s16 }
 0x1a0   : > { %s883_s16 = smov %s709_s17  ;;  %s884_s17 = smov %s781_s24 }
 0x1a1   : > { %s885_s18 = smov %s770_s21  ;;  %16 = sbr.rel (!%p14_p3) target bundleno = 3 (0x3), region = 71 }
 0x1a8   :  { %490 = vsyncpa [#allocation3], 1 }
 0x1a9   :  { %492 = vsyncpa [#allocation3 + $0x1], 1 }

</bundles_post_ra>
